<compile_context>
chip_gen: v7x
topology: tpu7x:2x2x1
jax: 0.10.0
libtpu: 0.0.40
codegen_flags: <defaults>
</compile_context>

<pallas_src>
import jax
import jax.numpy as jnp
from jax.experimental import pallas as pl
from jax.experimental.pallas import tpu as pltpu  # noqa: F401  (TPU backend)

NUM_MEMBERS = 30


def _fused_mlp_ensemble_kernel(x_ref, w1_ref, b1_ref, w2_ref, b2_ref, out_ref):
    # fc1 + ReLU for all ensemble members at once: (B, D) @ (D, E*H) on the MXU.
    h = jnp.dot(x_ref[...], w1_ref[...], preferred_element_type=jnp.float32)
    h = jnp.maximum(h + b1_ref[...], 0.0)                       # (B, E*H)

    # fc2 for all members via a block-diagonal weight: (B, E*H) @ (E*H, E).
    o = jnp.dot(h, w2_ref[...], preferred_element_type=jnp.float32)
    o = jax.nn.sigmoid(o + b2_ref[...])                         # (B, E)

    # Ensemble mean -> (B, 1); one small store at the end of the kernel.
    out_ref[...] = jnp.mean(o, axis=-1, keepdims=True)


def _mlp_ensemble_forward(x, w1, b1, w2, b2):
    """x: (B, D) f32; w1: (E, D, H); b1: (E, H); w2: (E, H, 1); b2: (E, 1)."""
    B, D = x.shape
    E, _, H = w1.shape

    # --- wrapper-side layout plumbing: fuse the ensemble onto the lane axis ---
    # fc1 weights as one (D, E*H) slab; column e*H + h == member e, hidden unit h.
    w1_fused = jnp.transpose(w1, (1, 0, 2)).reshape(D, E * H)       # (D, E*H)
    b1_fused = b1.reshape(1, E * H)                                 # (1, E*H)
    # Block-diagonal fc2 weight: column e only reads member e's hidden slice,
    # so one matmul reproduces E independent (H -> 1) heads.
    w2_bd = (w2[:, :, 0][:, :, None]
             * jnp.eye(E, dtype=w2.dtype)[:, None, :]).reshape(E * H, E)
    b2_fused = b2.reshape(1, E)                                     # (1, E)

    # Single invocation, no grid: every operand is a full-array VMEM block, so
    # there is no per-step DMA/pipeline overhead and no scratch needed.
    return pl.pallas_call(
        _fused_mlp_ensemble_kernel,
        out_shape=jax.ShapeDtypeStruct((B, 1), jnp.float32),
    )(x, w1_fused, b1_fused, w2_bd, b2_fused)


mlp_ensemble2_forward = jax.jit(_mlp_ensemble_forward)


def _reference(x, w1, b1, w2, b2):
    h = jnp.maximum(jnp.einsum("bd,edh->ebh", x, w1) + b1[:, None, :], 0.0)
    o = jax.nn.sigmoid(jnp.einsum("ebh,eho->ebo", h, w2) + b2[:, None, :])
    return o.mean(axis=0)


if __name__ == "__main__":
    B, D, H = 8, 32, 32  # batch, input_size, hidden_size

    key = jax.random.PRNGKey(0)
    kx, k1, k2, k3, k4 = jax.random.split(key, 5)

    x = jax.random.normal(kx, (B, D), dtype=jnp.float32)
    # Deterministic synthetic parameters (shapes per MLP.__init__), stacked
    # over the 30 ensemble members.
    w1 = 0.1 * jax.random.normal(k1, (NUM_MEMBERS, D, H), dtype=jnp.float32)
    b1 = 0.1 * jax.random.normal(k2, (NUM_MEMBERS, H), dtype=jnp.float32)
    w2 = 0.1 * jax.random.normal(k3, (NUM_MEMBERS, H, 1), dtype=jnp.float32)
    b2 = 0.1 * jax.random.normal(k4, (NUM_MEMBERS, 1), dtype=jnp.float32)

    out = jax.block_until_ready(mlp_ensemble2_forward(x, w1, b1, w2, b2))

    ref = _reference(x, w1, b1, w2, b2)
    assert out.shape == (B, 1)
    assert jnp.allclose(out, ref, atol=1e-5, rtol=1e-5)

    print("KERNEL_OK")
</pallas_src>

<mosaic_0001>
module attributes {stable_mosaic.version = 11 : i64} {
  func.func @_fused_mlp_ensemble_kernel(%arg0: memref<8x32xf32, #tpu.memory_space<vmem>>, %arg1: memref<32x960xf32, #tpu.memory_space<vmem>>, %arg2: memref<1x960xf32, #tpu.memory_space<vmem>>, %arg3: memref<960x30xf32, #tpu.memory_space<vmem>>, %arg4: memref<1x30xf32, #tpu.memory_space<vmem>>, %arg5: memref<8x1xf32, #tpu.memory_space<vmem>>) attributes {dimension_semantics = [], scalar_prefetch = 0 : i64, scratch_operands = 0 : i64, tpu.core_type = #tpu.core_type<tc>} {
    %c0 = arith.constant 0 : index
    %c0_0 = arith.constant 0 : index
    %0 = vector.load %arg0[%c0, %c0_0] : memref<8x32xf32, #tpu.memory_space<vmem>>, vector<8x32xf32>
    %c0_1 = arith.constant 0 : index
    %c0_2 = arith.constant 0 : index
    %1 = vector.load %arg1[%c0_1, %c0_2] : memref<32x960xf32, #tpu.memory_space<vmem>>, vector<32x960xf32>
    %cst = arith.constant dense<0.000000e+00> : vector<8x960xf32>
    %2 = tpu.matmul %0, %1, %cst {dimension_numbers = #tpu.dot_dimension_numbers<[1], [0], [0], [1], [0, 0, 1, 1], [], []>} : vector<8x32xf32>, vector<32x960xf32>, vector<8x960xf32> -> vector<8x960xf32>
    %c0_3 = arith.constant 0 : index
    %c0_4 = arith.constant 0 : index
    %3 = vector.load %arg2[%c0_3, %c0_4] : memref<1x960xf32, #tpu.memory_space<vmem>>, vector<1x960xf32>
    %4 = vector.broadcast %3 : vector<1x960xf32> to vector<8x960xf32>
    %5 = arith.addf %2, %4 : vector<8x960xf32>
    %cst_5 = arith.constant 0.000000e+00 : f32
    %6 = vector.broadcast %cst_5 : f32 to vector<8x960xf32>
    %7 = arith.maximumf %5, %6 : vector<8x960xf32>
    %c0_6 = arith.constant 0 : index
    %c0_7 = arith.constant 0 : index
    %8 = vector.load %arg3[%c0_6, %c0_7] : memref<960x30xf32, #tpu.memory_space<vmem>>, vector<960x30xf32>
    %cst_8 = arith.constant dense<0.000000e+00> : vector<8x30xf32>
    %9 = tpu.matmul %7, %8, %cst_8 {dimension_numbers = #tpu.dot_dimension_numbers<[1], [0], [0], [1], [0, 0, 1, 1], [], []>} : vector<8x960xf32>, vector<960x30xf32>, vector<8x30xf32> -> vector<8x30xf32>
    %c0_9 = arith.constant 0 : index
    %c0_10 = arith.constant 0 : index
    %10 = vector.load %arg4[%c0_9, %c0_10] : memref<1x30xf32, #tpu.memory_space<vmem>>, vector<1x30xf32>
    %11 = vector.broadcast %10 : vector<1x30xf32> to vector<8x30xf32>
    %12 = arith.addf %9, %11 : vector<8x30xf32>
    %13 = arith.negf %12 : vector<8x30xf32>
    %14 = math.exp %13 : vector<8x30xf32>
    %cst_11 = arith.constant 1.000000e+00 : f32
    %15 = vector.broadcast %cst_11 : f32 to vector<8x30xf32>
    %16 = arith.addf %15, %14 : vector<8x30xf32>
    %17 = arith.divf %15, %16 : vector<8x30xf32>
    %cst_12 = arith.constant dense<0.000000e+00> : vector<8xf32>
    %18 = vector.multi_reduction <add>, %17, %cst_12 [1] : vector<8x30xf32> to vector<8xf32>
    %19 = vector.shape_cast %18 : vector<8xf32> to vector<8x1xf32>
    %cst_13 = arith.constant 3.000000e+01 : f32
    %20 = vector.broadcast %cst_13 : f32 to vector<8x1xf32>
    %21 = arith.divf %19, %20 : vector<8x1xf32>
    %c0_14 = arith.constant 0 : index
    %c0_15 = arith.constant 0 : index
    %22 = vector.load %arg5[%c0_14, %c0_15] : memref<8x1xf32, #tpu.memory_space<vmem>>, vector<8x1xf32>
    tpu.vector_store %arg5[%c0_14, %c0_15], %21 {strides = array<i32>} : memref<8x1xf32, #tpu.memory_space<vmem>>, vector<8x1xf32>,
    return
  }
}

</mosaic_0001>

<bundles_post_ra>
// kernel: _mlp_ensemble_forward.1
= control target key start
LH: loop header
LB: loop body
LE: loop exit
PB: predicated region body
PF: predicated region fallthrough
CT: control target
= control target key end

     0   :  { %v1102_v3 = vmov 0.0   ;;  %vm95_vm0 = vcmask 261120   ;;  %vm518_vm1 = vcmask 523264   ;;  %vm808_vm2 = vcmask 244736   ;;  %s1652_s1 = inlined_call_operand.vmem [shape: f32[32,960], index: 1, kind: input, shape index: {}]   ;;  %s1653_s0 = inlined_call_operand.vmem [shape: f32[8,32], index: 0, kind: input, shape index: {}]   ;;  %s1654_s3 = inlined_call_operand.vmem [shape: f32[960,30], index: 3, kind: input, shape index: {}]   ;;  %s1655_s2 = inlined_call_operand.vmem [shape: f32[1,960], index: 2, kind: input, shape index: {}]   ;;  %s1656_s4 = inlined_call_operand.vmem [shape: f32[1,30], index: 4, kind: input, shape index: {}]   ;;  %s1657_s5 = inlined_call_operand.vmem [shape: f32[8,1], index: 5, kind: output, shape index: {}]  }
   0x1   :  { %v22_v0 = vld [vmem:[%s1652_s1 + $0x8] sm:$0xff]  ;;  %v21_v2 = vld [vmem:[%s1652_s1] sm:$0xff]  ;;  %163 = vmatprep.mubr.f32.mxu0 %v1102_v3  ;;  %376 = vmatprep.mubr.f32.mxu1 %v1102_v3  ;;  %v24_v12 = vld [vmem:[%s1652_s1 + $0x18] sm:$0xff]  ;;  %vm814_vm3 = vcmask 7168  }
   0x2   :  { %v30_v1 = vld [vmem:[%s1652_s1 + $0x48] sm:$0xff]  ;;  %v29_v5 = vld [vmem:[%s1652_s1 + $0x40] sm:$0xff]  ;;  %v32_v13 = vld [vmem:[%s1652_s1 + $0x58] sm:$0xff] }
   0x3   :  { %v932_v4 = vpack.c.bf16 %v30_v1, %v22_v0  ;;  %v38_v6 = vld [vmem:[%s1652_s1 + $0x88] sm:$0xff]  ;;  %v934_v8 = vpack.c.bf16 %v29_v5, %v21_v2  ;;  %v37_v10 = vld [vmem:[%s1652_s1 + $0x80] sm:$0xff]  ;;  %v940_v15 = vpack.c.bf16 %v32_v13, %v24_v12  ;;  %v23_v16 = vld [vmem:[%s1652_s1 + $0x10] sm:$0xff] }
   0x4   :  { %v46_v7 = vld [vmem:[%s1652_s1 + $0xc8] sm:$0xff]  ;;  %v45_v11 = vld [vmem:[%s1652_s1 + $0xc0] sm:$0xff]  ;;  %v31_v17 = vld [vmem:[%s1652_s1 + $0x50] sm:$0xff] }
   0x5   :  { %v936_v9 = vpack.c.bf16 %v46_v7, %v38_v6  ;;  %933 = vmatprep.subr.bf16.mxu0 %v932_v4  ;;  %v938_v14 = vpack.c.bf16 %v45_v11, %v37_v10  ;;  %v40_v18 = vld [vmem:[%s1652_s1 + $0x98] sm:$0xff]  ;;  %v1181_v20 = vld [vmem:[%s1653_s0] sm:$0xff]  ;;  %v39_v21 = vld [vmem:[%s1652_s1 + $0x90] sm:$0xff]  ;;  %v942_v23 = vpack.c.bf16 %v31_v17, %v23_v16 }
   0x6   :  { %935 = vmatpush1.bf16.msra.mxu0 %v934_v8  ;;  %v48_v19 = vld [vmem:[%s1652_s1 + $0xd8] sm:$0xff]  ;;  %v47_v22 = vld [vmem:[%s1652_s1 + $0xd0] sm:$0xff]  ;;  %v26_v24 = vld [vmem:[%s1652_s1 + $0x28] sm:$0xff] }
   0x7   :  { %937 = vmatprep.subr.bf16.mxu0 %v936_v9  ;;  %v34_v25 = vld [vmem:[%s1652_s1 + $0x68] sm:$0xff]  ;;  %v28_v26 = vld [vmem:[%s1652_s1 + $0x38] sm:$0xff]  ;;  %v944_v28 = vpack.c.bf16 %v48_v19, %v40_v18  ;;  %v27_v30 = vld [vmem:[%s1652_s1 + $0x30] sm:$0xff]  ;;  %v946_v38 = vpack.c.bf16 %v47_v22, %v39_v21 }
   0x8   :  { %v36_v27 = vld [vmem:[%s1652_s1 + $0x78] sm:$0xff]  ;;  %v35_v31 = vld [vmem:[%s1652_s1 + $0x70] sm:$0xff]  ;;  %v948_v39 = vpack.c.bf16 %v34_v25, %v26_v24  ;;  %v25_v40 = vld [vmem:[%s1652_s1 + $0x20] sm:$0xff] }
   0x9   :  { %v956_v29 = vpack.c.bf16 %v36_v27, %v28_v26  ;;  %v44_v32 = vld [vmem:[%s1652_s1 + $0xb8] sm:$0xff]  ;;  %v958_v33 = vpack.c.bf16 %v35_v31, %v27_v30  ;;  %v43_v35 = vld [vmem:[%s1652_s1 + $0xb0] sm:$0xff]  ;;  %v33_v41 = vld [vmem:[%s1652_s1 + $0x60] sm:$0xff] }
   0xa   :  { %939 = vmatpush1.bf16.msra.mxu0 %v938_v14  ;;  %v52_v34 = vld [vmem:[%s1652_s1 + $0xf8] sm:$0xff]  ;;  %v51_v36 = vld [vmem:[%s1652_s1 + $0xf0] sm:$0xff]  ;;  %v42_v42 = vld [vmem:[%s1652_s1 + $0xa8] sm:$0xff]  ;;  %v950_v49 = vpack.c.bf16 %v33_v41, %v25_v40 }
   0xb   :  { %941 = vmatprep.subr.bf16.mxu0 %v940_v15  ;;  %957 = vmatprep.subr.bf16.mxu1 %v956_v29  ;;  %v960_v37 = vpack.c.bf16 %v52_v34, %v44_v32  ;;  %v962_v43 = vpack.c.bf16 %v51_v36, %v43_v35  ;;  %v50_v44 = vld [vmem:[%s1652_s1 + $0xe8] sm:$0xff]  ;;  %v439_v45 = vld [vmem:[%s1654_s3 + $0x180] sm:$0xff]  ;;  %v441_v54 = vld [vmem:[%s1654_s3 + $0x190] sm:$0xff] }
   0xc   :  { %959 = vmatpush1.bf16.msra.mxu1 %v958_v33  ;;  %v440_v46 = vld [vmem:[%s1654_s3 + $0x188] sm:$0xff]  ;;  %v423_v48 = vld [vmem:[%s1654_s3 + $0x100] sm:$0xff]  ;;  %v952_v52 = vpack.c.bf16 %v50_v44, %v42_v42  ;;  %v442_v55 = vld [vmem:[%s1654_s3 + $0x198] sm:$0xff] }
   0xd   :  { %820 = vmatmul.mubr.msk.f32.vlgmr.msra.gmra.mrb[0].mxu0 %vm95_vm0, %v1181_v20  ;;  %961 = vmatprep.subr.bf16.mxu1 %v960_v37  ;;  %v996_v47 = vpack.c.bf16 %v440_v46, %v439_v45  ;;  %v41_v50 = vld [vmem:[%s1652_s1 + $0xa0] sm:$0xff]  ;;  %v424_v51 = vld [vmem:[%s1654_s3 + $0x108] sm:$0xff]  ;;  %v1000_v59 = vpack.c.bf16 %v442_v55, %v441_v54  ;;  %v425_v60 = vld [vmem:[%s1654_s3 + $0x110] sm:$0xff] }
   0xe   :  { %943 = vmatpush1.bf16.msra.mxu0 %v942_v23  ;;  %234 = vmatprep.mubr.f32.mxu0 %v1102_v3  ;;  %v49_v53 = vld [vmem:[%s1652_s1 + $0xe0] sm:$0xff]  ;;  %v408_v57 = vld [vmem:[%s1654_s3 + $0x88] sm:$0xff]  ;;  %v998_v58 = vpack.c.bf16 %v424_v51, %v423_v48  ;;  %v426_v61 = vld [vmem:[%s1654_s3 + $0x118] sm:$0xff] }
   0xf   :  { %945 = vmatprep.subr.bf16.mxu0 %v944_v28  ;;  %v407_v56 = vld [vmem:[%s1654_s3 + $0x80] sm:$0xff]  ;;  %v954_v62 = vpack.c.bf16 %v49_v53, %v41_v50  ;;  %v444_v0 = vld [vmem:[%s1654_s3 + $0x1a8] sm:$0xff]  ;;  %v409_v4 = vld [vmem:[%s1654_s3 + $0x90] sm:$0xff]  ;;  %v1002_v6 = vpack.c.bf16 %v426_v61, %v425_v60 }
  0x10   :  { %963 = vmatpush1.bf16.msra.mxu1 %v962_v43  ;;  %v443_v63 = vld [vmem:[%s1654_s3 + $0x1a0] sm:$0xff]  ;;  %v964_v1 = vpack.c.bf16 %v408_v57, %v407_v56  ;;  %v410_v5 = vld [vmem:[%s1654_s3 + $0x98] sm:$0xff]  ;;  %v428_v9 = vld [vmem:[%s1654_s3 + $0x128] sm:$0xff] }
  0x11   :  { %997 = vmatprep.subr.bf16.mxu1 %v996_v47  ;;  %v391_v2 = vld [vmem:[%s1654_s3] sm:$0xff]  ;;  %v1004_v7 = vpack.c.bf16 %v444_v0, %v443_v63  ;;  %v445_v11 = vld [vmem:[%s1654_s3 + $0x1b0] sm:$0xff]  ;;  %v446_v12 = vld [vmem:[%s1654_s3 + $0x1b8] sm:$0xff]  ;;  %v968_v13 = vpack.c.bf16 %v410_v5, %v409_v4 }
  0x12   :  { %947 = vmatpush1.bf16.msra.mxu0 %v946_v38  ;;  %v427_v8 = vld [vmem:[%s1654_s3 + $0x120] sm:$0xff]  ;;  %v393_v14 = vld [vmem:[%s1654_s3 + $0x10] sm:$0xff]  ;;  %v394_v15 = vld [vmem:[%s1654_s3 + $0x18] sm:$0xff]  ;;  %v1008_v19 = vpack.c.bf16 %v446_v12, %v445_v11 }
  0x13   :  { %949 = vmatprep.subr.bf16.mxu0 %v948_v39  ;;  %823 = vmatmul.mubr.msk.f32.vlgmr.msra.gmra.mrb[0].mxu1 %vm95_vm0, %v1181_v20  ;;  %v411_v16 = vld [vmem:[%s1654_s3 + $0xa0] sm:$0xff]  ;;  %v412_v17 = vld [vmem:[%s1654_s3 + $0xa8] sm:$0xff]  ;;  %v1006_v18 = vpack.c.bf16 %v428_v9, %v427_v8  ;;  %v429_v21 = vld [vmem:[%s1654_s3 + $0x130] sm:$0xff]  ;;  %v970_v23 = vpack.c.bf16 %v394_v15, %v393_v14 }
  0x14   :  { %999 = vmatpush3.bf16.msra.mxu1 %v998_v58  ;;  %v430_v22 = vld [vmem:[%s1654_s3 + $0x138] sm:$0xff]  ;;  %v447_v24 = vld [vmem:[%s1654_s3 + $0x1c0] sm:$0xff]  ;;  %v972_v25 = vpack.c.bf16 %v412_v17, %v411_v16  ;;  %v396_v27 = vld [vmem:[%s1654_s3 + $0x28] sm:$0xff] }
  0x15   :  { %821 = vmatmul.mubr.msk.f32.vlgmr.msra.gmra.mrb[2].mxu0 %vm95_vm0, %v1181_v20  ;;  %1001 = vmatprep.subr.bf16.mxu1 %v1000_v59  ;;  %v395_v26 = vld [vmem:[%s1654_s3 + $0x20] sm:$0xff]  ;;  %v413_v28 = vld [vmem:[%s1654_s3 + $0xb0] sm:$0xff]  ;;  %v414_v29 = vld [vmem:[%s1654_s3 + $0xb8] sm:$0xff]  ;;  %v1010_v30 = vpack.c.bf16 %v430_v22, %v429_v21  ;;  %v1103_v22 = vmov 0.0|0.0  }
  0x16   :  { %951 = vmatpush1.bf16.msra.mxu0 %v950_v49  ;;  %305 = vmatprep.mubr.f32.mxu0 %v1102_v3  ;;  %v392_v3 = vld [vmem:[%s1654_s3 + $0x8] sm:$0xff]  ;;  %v431_v32 = vld [vmem:[%s1654_s3 + $0x140] sm:$0xff]  ;;  %v974_v34 = vpack.c.bf16 %v396_v27, %v395_v26  ;;  %v976_v35 = vpack.c.bf16 %v414_v29, %v413_v28  ;;  %v397_v36 = vld [vmem:[%s1654_s3 + $0x30] sm:$0xff] }
  0x17   :  { %953 = vmatprep.subr.bf16.mxu0 %v952_v52  ;;  %v966_v10 = vpack.c.bf16 %v392_v3, %v391_v2  ;;  %v432_v33 = vld [vmem:[%s1654_s3 + $0x148] sm:$0xff]  ;;  %v398_v37 = vld [vmem:[%s1654_s3 + $0x38] sm:$0xff]  ;;  %v415_v38 = vld [vmem:[%s1654_s3 + $0xc0] sm:$0xff] }
  0x18   :  { %1003 = vmatpush3.bf16.msra.mxu1 %v1002_v6  ;;  %v416_v39 = vld [vmem:[%s1654_s3 + $0xc8] sm:$0xff]  ;;  %v1014_v40 = vpack.c.bf16 %v432_v33, %v431_v32  ;;  %v978_v41 = vpack.c.bf16 %v398_v37, %v397_v36  ;;  %v399_v43 = vld [vmem:[%s1654_s3 + $0x40] sm:$0xff]  ;;  %v417_v45 = vld [vmem:[%s1654_s3 + $0xd0] sm:$0xff] }
  0x19   :  { %1005 = vmatprep.subr.bf16.mxu1 %v1004_v7  ;;  %v980_v42 = vpack.c.bf16 %v416_v39, %v415_v38  ;;  %v400_v44 = vld [vmem:[%s1654_s3 + $0x48] sm:$0xff]  ;;  %v418_v46 = vld [vmem:[%s1654_s3 + $0xd8] sm:$0xff]  ;;  %v401_v49 = vld [vmem:[%s1654_s3 + $0x50] sm:$0xff] }
  0x1a   :  { %955 = vmatpush1.bf16.msra.mxu0 %v954_v62  ;;  %v982_v47 = vpack.c.bf16 %v400_v44, %v399_v43  ;;  %v984_v48 = vpack.c.bf16 %v418_v46, %v417_v45  ;;  %v402_v50 = vld [vmem:[%s1654_s3 + $0x58] sm:$0xff]  ;;  %v419_v51 = vld [vmem:[%s1654_s3 + $0xe0] sm:$0xff]  ;;  %v420_v52 = vld [vmem:[%s1654_s3 + $0xe8] sm:$0xff] }
  0x1b   :  { %965 = vmatprep.subr.bf16.mxu0 %v964_v1  ;;  %v986_v53 = vpack.c.bf16 %v402_v50, %v401_v49  ;;  %v988_v54 = vpack.c.bf16 %v420_v52, %v419_v51  ;;  %v403_v55 = vld [vmem:[%s1654_s3 + $0x60] sm:$0xff]  ;;  %v404_v56 = vld [vmem:[%s1654_s3 + $0x68] sm:$0xff]  ;;  %v421_v58 = vld [vmem:[%s1654_s3 + $0xf0] sm:$0xff] }
  0x1c   :  { %1007 = vmatpush3.bf16.msra.mxu1 %v1006_v18  ;;  %v990_v57 = vpack.c.bf16 %v404_v56, %v403_v55  ;;  %v422_v59 = vld [vmem:[%s1654_s3 + $0xf8] sm:$0xff]  ;;  %v449_v60 = vld [vmem:[%s1654_s3 + $0x1d0] sm:$0xff]  ;;  %v451_v6 = vld [vmem:[%s1654_s3 + $0x1e0] sm:$0xff] }
  0x1d   :  { %822 = vmatmul.mubr.msk.f32.vlgmr.msra.gmra.mrb[4].mxu0 %vm95_vm0, %v1181_v20  ;;  %v448_v20 = vld [vmem:[%s1654_s3 + $0x1c8] sm:$0xff]  ;;  %1009 = vmatprep.subr.bf16.mxu1 %v1008_v19  ;;  %v992_v61 = vpack.c.bf16 %v422_v59, %v421_v58  ;;  %v450_v62 = vld [vmem:[%s1654_s3 + $0x1d8] sm:$0xff]  ;;  %v405_v63 = vld [vmem:[%s1654_s3 + $0x70] sm:$0xff] }
  0x1e   :  { %967 = vmatpush3.bf16.msra.mxu0 %v966_v10  ;;  %v1012_v31 = vpack.c.bf16 %v448_v20, %v447_v24  ;;  %v406_v0 = vld [vmem:[%s1654_s3 + $0x78] sm:$0xff]  ;;  %v1016_v1 = vpack.c.bf16 %v450_v62, %v449_v60  ;;  %v433_v3 = vld [vmem:[%s1654_s3 + $0x150] sm:$0xff]  ;;  %v452_v7 = vld [vmem:[%s1654_s3 + $0x1e8] sm:$0xff] }
  0x1f   :  { %969 = vmatprep.subr.bf16.mxu0 %v968_v13  ;;  %v994_v2 = vpack.c.bf16 %v406_v0, %v405_v63  ;;  %v434_v4 = vld [vmem:[%s1654_s3 + $0x158] sm:$0xff]  ;;  %v471_v8 = vld [vmem:[%s1654_s3 + $0x280] sm:$0xff]  ;;  %v1020_v9 = vpack.c.bf16 %v452_v7, %v451_v6  ;;  %v472_v10 = vld [vmem:[%s1654_s3 + $0x288] sm:$0xff] }
  0x20   :  { %1011 = vmatpush3.bf16.msra.mxu1 %v1010_v30  ;;  %v1018_v5 = vpack.c.bf16 %v434_v4, %v433_v3  ;;  %v435_v11 = vld [vmem:[%s1654_s3 + $0x160] sm:$0xff]  ;;  %v436_v12 = vld [vmem:[%s1654_s3 + $0x168] sm:$0xff]  ;;  %v1028_v13 = vpack.c.bf16 %v472_v10, %v471_v8  ;;  %v453_v15 = vld [vmem:[%s1654_s3 + $0x1f0] sm:$0xff] }
  0x21   :  { %1013 = vmatprep.subr.bf16.mxu1 %v1012_v31  ;;  %v1022_v14 = vpack.c.bf16 %v436_v12, %v435_v11  ;;  %v454_v16 = vld [vmem:[%s1654_s3 + $0x1f8] sm:$0xff]  ;;  %v437_v18 = vld [vmem:[%s1654_s3 + $0x170] sm:$0xff]  ;;  %v455_v32 = vld [vmem:[%s1654_s3 + $0x200] sm:$0xff] }
  0x22   :  { %971 = vmatpush3.bf16.msra.mxu0 %v970_v23  ;;  %v1024_v17 = vpack.c.bf16 %v454_v16, %v453_v15  ;;  %v438_v19 = vld [vmem:[%s1654_s3 + $0x178] sm:$0xff]  ;;  %v55_v23 = vlaneseq  ;;  %v456_v33 = vld [vmem:[%s1654_s3 + $0x208] sm:$0xff]  ;;  %v473_v37 = vld [vmem:[%s1654_s3 + $0x290] sm:$0xff] }
  0x23   :  { %973 = vmatprep.subr.bf16.mxu0 %v972_v25  ;;  %v1026_v21 = vpack.c.bf16 %v438_v19, %v437_v18  ;;  %v1452_v25 = vld [vmem:[%s1655_s2] sm:$0xff]  ;;  %v474_v38 = vld [vmem:[%s1654_s3 + $0x298] sm:$0xff]  ;;  %v457_v45 = vld [vmem:[%s1654_s3 + $0x210] sm:$0xff] }
  0x24   :  { %1015 = vmatpush3.bf16.msra.mxu1 %v1014_v40  ;;  %v1446_v24 = vshrl.u32 %v55_v23, 7  ;;  %v1032_v44 = vpack.c.bf16 %v474_v38, %v473_v37  ;;  %v458_v46 = vld [vmem:[%s1654_s3 + $0x218] sm:$0xff]  ;;  %v476_v49 = vld [vmem:[%s1654_s3 + $0x2a8] sm:$0xff]  ;;  %v459_v52 = vld [vmem:[%s1654_s3 + $0x220] sm:$0xff] }
  0x25   :  { %1017 = vmatprep.subr.bf16.mxu1 %v1016_v1  ;;  %v1034_v51 = vpack.c.bf16 %v458_v46, %v457_v45  ;;  %v487_v58 = vld [vmem:[%s1654_s3 + $0x300] sm:$0xff]  ;;  %v488_v59 = vld [vmem:[%s1654_s3 + $0x308] sm:$0xff]  ;;  %v478_v62 = vld [vmem:[%s1654_s3 + $0x2b8] sm:$0xff] }
  0x26   :  { %975 = vmatpush3.bf16.msra.mxu0 %v974_v34  ;;  %v57_v20 = vsub.s32 0, %v1446_v24  ;;  %v61_v26 = vsub.s32 1, %v1446_v24  ;;  %v65_v34 = vsub.s32 2, %v1446_v24  ;;  %v69_v36 = vsub.s32 3, %v1446_v24  ;;  %v489_v10 = vld [vmem:[%s1654_s3 + $0x310] sm:$0xff]  ;;  %v490_v11 = vld [vmem:[%s1654_s3 + $0x318] sm:$0xff] }
  0x27   :  { %977 = vmatprep.subr.bf16.mxu0 %v976_v35  ;;  %v77_v63 = vsub.s32 5, %v1446_v24  ;;  %v1061_v4 = vpack.c.bf16 %v488_v59, %v487_v58  ;;  %v479_v12 = vld [vmem:[%s1654_s3 + $0x2c0] sm:$0xff]  ;;  %v464_v23 = vld [vmem:[%s1654_s3 + $0x248] sm:$0xff]  ;;  %v493_v37 = vld [vmem:[%s1654_s3 + $0x330] sm:$0xff] }
  0x28   :  { %1019 = vmatpush3.bf16.msra.mxu1 %v1018_v5  ;;  %v58_v27 = vrot.slane %v1452_v25, %v57_v20  ;;  %v62_v28 = vrot.slane %v1452_v25, %v61_v26  ;;  %v66_v43 = vrot.slane %v1452_v25, %v65_v34  ;;  %v461_v5 = vld [vmem:[%s1654_s3 + $0x230] sm:$0xff]  ;;  %v463_v18 = vld [vmem:[%s1654_s3 + $0x240] sm:$0xff]  ;;  %v492_v26 = vld [vmem:[%s1654_s3 + $0x328] sm:$0xff] }
  0x29   :  { %1021 = vmatprep.subr.bf16.mxu1 %v1020_v9  ;;  %v462_v9 = vld [vmem:[%s1654_s3 + $0x238] sm:$0xff]  ;;  %v491_v20 = vld [vmem:[%s1654_s3 + $0x320] sm:$0xff]  ;;  %v468_v46 = vld [vmem:[%s1654_s3 + $0x268] sm:$0xff] }
  0x2a   :  { %979 = vmatpush3.bf16.msra.mxu0 %v978_v41  ;;  %v1030_v41 = vpack.c.bf16 %v456_v33, %v455_v32  ;;  %v1042_v16 = vpack.c.bf16 %v462_v9, %v461_v5  ;;  %v1067_v32 = vpack.c.bf16 %v492_v26, %v491_v20  ;;  %v465_v33 = vld [vmem:[%s1654_s3 + $0x250] sm:$0xff]  ;;  %v494_v38 = vld [vmem:[%s1654_s3 + $0x338] sm:$0xff]  ;;  %v824_v26 = vld [vmem:[%s1656_s4] ss:$0 sm:$0xff] }
  0x2b   :  { %981 = vmatprep.subr.bf16.mxu0 %v980_v42  ;;  %v85_v42 = vsub.s32 7, %v1446_v24  ;;  %v498_v58 = vld [vmem:[%s1654_s3 + $0x358] sm:$0xff]  ;;  %v505_v9 = vld [vmem:[%s1654_s3 + $0x390] sm:$0xff] }
  0x2c   :  { %1023 = vmatpush3.bf16.msra.mxu1 %v1022_v14  ;;  %v78_v14 = vrot.slane %v1452_v25, %v77_v63  ;;  %v500_v63 = vld [vmem:[%s1654_s3 + $0x368] sm:$0xff] }
  0x2d   :  { %1025 = vmatprep.subr.bf16.mxu1 %v1024_v17  ;;  %v1064_v17 = vpack.c.bf16 %v490_v11, %v489_v10  ;;  %v506_v10 = vld [vmem:[%s1654_s3 + $0x398] sm:$0xff] }
  0x2e   :  { %983 = vmatpush3.bf16.msra.mxu0 %v982_v47  ;;  %v70_v47 = vrot.slane %v1452_v25, %v69_v36  ;;  %v466_v36 = vld [vmem:[%s1654_s3 + $0x258] sm:$0xff]  ;;  %v1088_v11 = vpack.c.bf16 %v506_v10, %v505_v9 }
  0x2f   :  { %985 = vmatprep.subr.bf16.mxu0 %v984_v48  ;;  %v475_v48 = vld [vmem:[%s1654_s3 + $0x2a0] sm:$0xff] }
  0x30   :  { %1027 = vmatpush3.bf16.msra.mxu1 %v1026_v21  ;;  %v1036_v56 = vpack.c.bf16 %v476_v49, %v475_v48  ;;  %v496_v48 = vld [vmem:[%s1654_s3 + $0x348] sm:$0xff]  ;;  %v485_v49 = vld [vmem:[%s1654_s3 + $0x2f0] sm:$0xff] }
  0x31   :  { %1060 = vmatprep.subr.bf16.mxu1 %v1103_v22 }
  0x32   :  { %987 = vmatpush3.bf16.msra.mxu0 %v986_v53  ;;  %v86_v53 = vrot.slane %v1452_v25, %v85_v42  ;;  %v1050_v42 = vpack.c.bf16 %v466_v36, %v465_v33 }
  0x33   :  { %989 = vmatprep.subr.bf16.mxu0 %v988_v54 }
  0x36   :  { %991 = vmatpush3.bf16.msra.mxu0 %v990_v57  ;;  %v460_v57 = vld [vmem:[%s1654_s3 + $0x228] sm:$0xff] }
  0x37   :  { %993 = vmatprep.subr.bf16.mxu0 %v992_v61  ;;  %v477_v61 = vld [vmem:[%s1654_s3 + $0x2b0] sm:$0xff]  ;;  %v1038_v3 = vpack.c.bf16 %v460_v57, %v459_v52 }
  0x38   :  { %v1040_v8 = vpack.c.bf16 %v478_v62, %v477_v61  ;;  %v497_v57 = vld [vmem:[%s1654_s3 + $0x350] sm:$0xff]  ;;  %v499_v62 = vld [vmem:[%s1654_s3 + $0x360] sm:$0xff] }
  0x39   :  { %v1076_v61 = vpack.c.bf16 %v498_v58, %v497_v57 }
  0x3a   :  { %995 = vmatpush3.bf16.msra.mxu0 %v994_v2 }
  0x3b   :  { %1029 = vmatprep.subr.bf16.mxu0 %v1028_v13  ;;  %v480_v13 = vld [vmem:[%s1654_s3 + $0x2c8] sm:$0xff] }
  0x3c   :  { %v1044_v21 = vpack.c.bf16 %v480_v13, %v479_v12  ;;  %v81_v12 = vsub.s32 6, %v1446_v24  ;;  %v507_v13 = vld [vmem:[%s1654_s3 + $0x3a0] sm:$0xff] }
  0xe0   :  { %v165_v29 = vpop.f32.mrb[0].mxu0 }
  0xe1   :  { %v166_v30 = vadd.f32 %v165_v29, %v58_v27  ;;  %v167_v31 = vpop.f32.mrb[1].mxu0  ;;  %v482_v29 = vld [vmem:[%s1654_s3 + $0x2d8] sm:$0xff] }
  0xe2   :  { %v168_v35 = vadd.f32 %v167_v31, %v62_v28  ;;  %v481_v28 = vld [vmem:[%s1654_s3 + $0x2d0] sm:$0xff]  ;;  %v1046_v31 = vpack.c.bf16 %v464_v23, %v463_v18 }
  0xe3   :  { %v383_v39 = vmax.f32 %v166_v30, 0.0 }
  0xe4   :  { %v384_v40 = vmax.f32 %v168_v35, 0.0  ;;  %v1048_v35 = vpack.c.bf16 %v482_v29, %v481_v28 }
  0xe6   :  { %586 = vmatprep.mubr.f32.mxu0 %v384_v40  ;;  %v1506_v0 = vpop.f32.mrb[0].mxu1  ;;  %v484_v40 = vld [vmem:[%s1654_s3 + $0x2e8] sm:$0xff] }
  0xe7   :  { %587 = vmatmul.mubr.f32.vlgmr.msra.gmra.mrb[6].mxu0 %v383_v39  ;;  %v380_v1 = vpop.f32.mrb[1].mxu1  ;;  %v483_v39 = vld [vmem:[%s1654_s3 + $0x2e0] sm:$0xff] }
  0xe8   :  { %1031 = vmatpush3.bf16.msra.mxu0 %v1030_v41  ;;  %v236_v50 = vpop.f32.mrb[2].mxu0  ;;  %v381_v6 = vadd.f32 %v380_v1, %v86_v53  ;;  %v73_v41 = vsub.s32 4, %v1446_v24  ;;  %v1052_v45 = vpack.c.bf16 %v484_v40, %v483_v39  ;;  %v510_v24 = vld [vmem:[%s1654_s3 + $0x3b8] sm:$0xff] }
  0xe9   :  { %v237_v54 = vadd.f32 %v236_v50, %v66_v43  ;;  %v238_v55 = vpop.f32.mrb[3].mxu0  ;;  %1033 = vmatprep.subr.bf16.mxu0 %v1032_v44  ;;  %v1070_v43 = vpack.c.bf16 %v494_v38, %v493_v37  ;;  %v467_v44 = vld [vmem:[%s1654_s3 + $0x260] sm:$0xff]  ;;  %v486_v50 = vld [vmem:[%s1654_s3 + $0x2f8] sm:$0xff] }
  0xea   :  { %v239_v60 = vadd.f32 %v238_v55, %v70_v47  ;;  %v390_v15 = vmax.f32 %v381_v6, 0.0  ;;  %v495_v47 = vld [vmem:[%s1654_s3 + $0x340] sm:$0xff]  ;;  %v1054_v52 = vpack.c.bf16 %v468_v46, %v467_v44  ;;  %v1056_v55 = vpack.c.bf16 %v486_v50, %v485_v49 }
  0xeb   :  { %v385_v7 = vmax.f32 %v237_v54, 0.0  ;;  %v1073_v53 = vpack.c.bf16 %v496_v48, %v495_v47  ;;  %v469_v54 = vld [vmem:[%s1654_s3 + $0x270] sm:$0xff]  ;;  %v503_v6 = vld [vmem:[%s1654_s3 + $0x380] sm:$0xff] }
  0xec   :  { %v386_v2 = vmax.f32 %v239_v60, 0.0  ;;  %1035 = vmatpush3.bf16.msra.mxu0 %v1034_v51  ;;  %v74_v51 = vrot.slane %v1452_v25, %v73_v41 }
  0xed   :  { %1037 = vmatprep.subr.bf16.mxu0 %v1036_v56  ;;  %v470_v56 = vld [vmem:[%s1654_s3 + $0x278] sm:$0xff] }
  0xee   :  { %656 = vmatprep.mubr.f32.mxu1 %v386_v2  ;;  %v1058_v60 = vpack.c.bf16 %v470_v56, %v469_v54  ;;  %v1079_v2 = vpack.c.bf16 %v500_v63, %v499_v62 }
  0xef   :  { %657 = vmatmul.mubr.f32.vlgmr.msra.gmra.mrb[2].mxu1 %v385_v7  ;;  %v504_v7 = vld [vmem:[%s1654_s3 + $0x388] sm:$0xff] }
  0xf0   :  { %1039 = vmatpush3.bf16.msra.mxu0 %v1038_v3  ;;  %1062 = vmatpush1.bf16.msra.mxu1 %v1061_v4  ;;  %v307_v19 = vpop.f32.mrb[4].mxu0  ;;  %v501_v3 = vld [vmem:[%s1654_s3 + $0x370] sm:$0xff]  ;;  %v502_v4 = vld [vmem:[%s1654_s3 + $0x378] sm:$0xff] }
  0xf1   :  { %1041 = vmatprep.subr.bf16.mxu0 %v1040_v8  ;;  %1063 = vmatprep.subr.bf16.mxu1 %v1103_v22  ;;  %v309_v27 = vpop.f32.mrb[5].mxu0  ;;  %v308_v59 = vadd.f32 %v307_v19, %v74_v51  ;;  %v1082_v5 = vpack.c.bf16 %v502_v4, %v501_v3  ;;  %v1085_v8 = vpack.c.bf16 %v504_v7, %v503_v6 }
  0xf2   :  { %v310_v30 = vadd.f32 %v309_v27, %v78_v14  ;;  %825 = vmatprep.mubr.msk.f32.mxu1 %vm518_vm1, %v390_v15  ;;  %v508_v14 = vld [vmem:[%s1654_s3 + $0x3a8] sm:$0xff] }
  0xf3   :  { %v387_v1 = vmax.f32 %v308_v59, 0.0  ;;  %v1091_v15 = vpack.c.bf16 %v508_v14, %v507_v13 }
  0xf4   :  { %1043 = vmatpush3.bf16.msra.mxu0 %v1042_v16  ;;  %1065 = vmatpush1.bf16.msra.mxu1 %v1064_v17  ;;  %v388_v34 = vmax.f32 %v310_v30, 0.0  ;;  %v82_v16 = vrot.slane %v1452_v25, %v81_v12  ;;  %v509_v17 = vld [vmem:[%s1654_s3 + $0x3b0] sm:$0xff] }
  0xf5   :  { %1045 = vmatprep.subr.bf16.mxu0 %v1044_v21  ;;  %1066 = vmatprep.subr.bf16.mxu1 %v1103_v22  ;;  %v1094_v18 = vpack.c.bf16 %v510_v24, %v509_v17 }
  0xf6   :  { %726 = vmatprep.mubr.f32.mxu0 %v388_v34  ;;  %v379_v19 = vadd.f32 %v1506_v0, %v82_v16 }
  0xf8   :  { %1047 = vmatpush3.bf16.msra.mxu0 %v1046_v31  ;;  %1068 = vmatpush1.bf16.msra.mxu1 %v1067_v32  ;;  %v389_v21 = vmax.f32 %v379_v19, 0.0 }
  0xf9   :  { %1049 = vmatprep.subr.bf16.mxu0 %v1048_v35  ;;  %1069 = vmatprep.subr.bf16.mxu1 %v1103_v22 }
  0xfc   :  { %1051 = vmatpush3.bf16.msra.mxu0 %v1050_v42  ;;  %1071 = vmatpush1.bf16.msra.mxu1 %v1070_v43 }
  0xfd   :  { %1053 = vmatprep.subr.bf16.mxu0 %v1052_v45  ;;  %1072 = vmatprep.subr.bf16.mxu1 %v1103_v22 }
 0x100   :  { %1055 = vmatpush3.bf16.msra.mxu0 %v1054_v52  ;;  %1074 = vmatpush1.bf16.msra.mxu1 %v1073_v53 }
 0x101   :  { %1057 = vmatprep.subr.bf16.mxu0 %v1056_v55  ;;  %1075 = vmatprep.subr.bf16.mxu1 %v1103_v22 }
 0x104   :  { %1059 = vmatpush3.bf16.msra.mxu0 %v1058_v60  ;;  %1077 = vmatpush1.bf16.msra.mxu1 %v1076_v61 }
 0x105   :  { %1078 = vmatprep.subr.bf16.mxu1 %v1103_v22 }
 0x107   :  { %727 = vmatmul.mubr.f32.vlgmr.msra.gmra.mrb[8].mxu0 %v387_v1 }
 0x108   :  { %1080 = vmatpush1.bf16.msra.mxu1 %v1079_v2 }
 0x109   :  { %1081 = vmatprep.subr.bf16.mxu1 %v1103_v22 }
 0x10c   :  { %1083 = vmatpush1.bf16.msra.mxu1 %v1082_v5 }
 0x10d   :  { %1084 = vmatprep.subr.bf16.mxu1 %v1103_v22 }
 0x110   :  { %1086 = vmatpush1.bf16.msra.mxu1 %v1085_v8 }
 0x111   :  { %1087 = vmatprep.subr.bf16.mxu1 %v1103_v22 }
 0x114   :  { %1089 = vmatpush1.bf16.msra.mxu1 %v1088_v11 }
 0x115   :  { %1090 = vmatprep.subr.bf16.mxu1 %v1103_v22 }
 0x118   :  { %1092 = vmatpush1.bf16.msra.mxu1 %v1091_v15 }
 0x119   :  { %1093 = vmatprep.subr.bf16.mxu1 %v1103_v22 }
 0x11c   :  { %1095 = vmatpush1.bf16.msra.mxu1 %v1094_v18 }
 0x11f   :  { %797 = vmatmul.mubr.f32.vlgmr.msra.gmra.mrb[4].mxu1 %v389_v21 }
 0x1ba   :  { %v859_v25 = vpop.f32.mrb[6].mxu0 }
 0x1bb   :  { %v860_v23 = vpop.f32.mrb[7].mxu0 }
 0x1bc   :  { %v861_v20 = vadd.f32 %v860_v23, %v859_v25 }
 0x1be   :  { %v589_v29 = vadd.f32 %v861_v20, %v824_v26 }
 0x1c2   :  { %v894_v27 = vpop.f32.mrb[2].mxu1 }
 0x1c3   :  { %v895_v28 = vpop.f32.mrb[3].mxu1 }
 0x1c4   :  { %v896_v30 = vadd.f32 %v895_v28, %v894_v27 }
 0x1c6   :  { %v659_v31 = vadd.f32 %v896_v30, %v589_v29 }
 0x1da   :  { %v929_v32 = vpop.f32.mrb[8].mxu0 }
 0x1db   :  { %v930_v33 = vpop.f32.mrb[9].mxu0 }
 0x1dc   :  { %v931_v0 = vadd.f32 %v930_v33, %v929_v32 }
 0x1de   :  { %v729_v34 = vadd.f32 %v931_v0, %v659_v31 }
 0x1f2   :  { %v798_v22 = vpop.f32.mrb[4].mxu1 }
 0x1f3   :  { %v799_v35 = vadd.f32 %v798_v22, %v729_v34  ;;  %v800_v36 = vpop.f32.mrb[5].mxu1 }
 0x1f5   :  { %v826_v37 = vmul.f32 -1.442695, %v799_v35 }
 0x1f7   :  { %1098 = vpow2.f32 %v826_v37 }
 0x201   :  { %v1099_v38 = vpop.eup %1098 }
 0x202   :  { %v805_v39 = vadd.f32 1.0, %v1099_v38 }
 0x204   :  { %1100 = vrcp.f32 %v805_v39 }
 0x20e   :  { %v1101_v40 = vpop.eup %1100 }
 0x20f   :  { %v809_v41 = vsel %vm808_vm2, %v1101_v40, 0.0 }
 0x210   :  { %810 = vadd.xlane.f32.xlu0 %v809_v41 }
 0x29d   :  { %v811_v42 = vpop.xlane.xlu0 %810 }
 0x29e   :  { %v813_v43 = vmul.f32 0.033333335, %v811_v42 }
 0x2a0   :  { %815 = vst.msk [vmem:[%s1657_s5] sm:$0xff] %vm814_vm3, %v813_v43 }

</bundles_post_ra>
